<compile_context>
chip_gen: v6e
topology: v6e:2x2x1
jax: 0.10.0
libtpu: 0.0.40
codegen_flags: <defaults>
</compile_context>

<pallas_src>
import functools
import math

import jax
import jax.numpy as jnp
from jax import lax
from jax.experimental import pallas as pl
from jax.experimental.pallas import tpu as pltpu

# Above the 32 MiB scoped default, still <= v7x's 64 MiB physical VMEM.
# On v5e/v6e (128 MiB physical) this can be raised to 64-100 MiB.
_VMEM_LIMIT = 48 * 1024 * 1024


# ---------------------------------------------------------------------------
# Kernel 1: fused QKV projection (1x1 Conv1d == per-timestep matmul), NCT in,
# head-major [B, H, D, T] bf16 out.
# ---------------------------------------------------------------------------
def _qkv_proj_kernel(x_ref, wqkv_ref, bqkv_ref, q_ref, k_ref, v_ref):
    x = x_ref[0].astype(jnp.bfloat16)                                    # [C, t]
    # One MXU weight-push with M = 3C instead of three M = C pushes (bf16 MXU,
    # f32 accumulation).
    qkv = jnp.dot(wqkv_ref[...], x,
                  preferred_element_type=jnp.float32)                    # [3C, t]
    qkv = (qkv + bqkv_ref[...]).astype(q_ref.dtype)                      # bf16 [3C, t]
    h, d = q_ref.shape[1], q_ref.shape[2]
    c = h * d
    # Head split = sublane slicing + leading-dim reshape (lanes untouched).
    q_ref[0] = qkv[0:c].reshape(h, d, -1)
    k_ref[0] = qkv[c:2 * c].reshape(h, d, -1)
    v_ref[0] = qkv[2 * c:3 * c].reshape(h, d, -1)


# ---------------------------------------------------------------------------
# Kernel 2: flash-style attention + fused output projection (conv_o).
# Layout convention: time is always the lane (last) dimension.
#   q/k/v refs: [1, H, D, t]  (bf16, 1/sqrt(D) already folded into q)
#   scores s  : [H, t_kv, t_q] (f32; kv axis on sublanes, q axis on lanes)
#   acc       : [H, D, t_q]
# ---------------------------------------------------------------------------
def _flash_attn_kernel(q_ref, k_ref, v_ref, wo_ref, bo_ref, o_ref,
                       m_sc, l_sc, acc_sc, *, t_actual, needs_mask):
    ki = pl.program_id(2)
    nk = pl.num_programs(2)

    @pl.when(ki == 0)
    def _init():
        m_sc[...] = jnp.full(m_sc.shape, -jnp.inf, m_sc.dtype)
        l_sc[...] = jnp.zeros(l_sc.shape, l_sc.dtype)
        acc_sc[...] = jnp.zeros(acc_sc.shape, acc_sc.dtype)

    q = q_ref[0]                      # [H, D, tq]  bf16
    k = k_ref[0]                      # [H, D, tkv] bf16
    v = v_ref[0]                      # [H, D, tkv] bf16
    t_kv = k.shape[-1]

    # s[h, kv, q] = sum_d k[h, d, kv] * q[h, d, q]   (head-batched, f32 accum)
    s = lax.dot_general(k, q, (((1,), (1,)), ((0,), (0,))),
                        preferred_element_type=jnp.float32)              # [H, tkv, tq]

    if needs_mask:  # static python branch: only traced when T was padded
        # Padded key columns only exist in the LAST kv tile: mask there only,
        # so the compare/select stays off the VPU for every other kv step.
        def _mask(s_in):
            kv_pos = ki * t_kv + lax.broadcasted_iota(jnp.int32, s_in.shape, 1)
            return jnp.where(kv_pos < t_actual, s_in, jnp.float32(-1e30))

        s = lax.cond(ki == nk - 1, _mask, lambda s_in: s_in, s)

    m_prev = m_sc[...]                                                   # [H, 1, tq]
    m_new = jnp.maximum(m_prev, s.max(axis=1, keepdims=True))
    alpha = jnp.exp(m_prev - m_new)                                      # [H, 1, tq]
    p = jnp.exp(s - m_new)                                               # [H, tkv, tq] f32
    l_sc[...] = alpha * l_sc[...] + p.sum(axis=1, keepdims=True)
    # pv[h, d, q] = sum_kv v[h, d, kv] * p[h, kv, q]  (bf16 MXU, f32 accum)
    pv = lax.dot_general(v, p.astype(jnp.bfloat16),
                         (((2,), (1,)), ((0,), (0,))),
                         preferred_element_type=jnp.float32)             # [H, D, tq]
    acc_sc[...] = alpha * acc_sc[...] + pv
    m_sc[...] = m_new

    @pl.when(ki == nk - 1)
    def _finalize():
        # Exact softmax normalization (the approximate reciprocal was the v1
        # correctness bug); runs once per q tile so the cost is negligible.
        attn = acc_sc[...] * (1.0 / l_sc[...])                           # [H, D, tq] f32
        h, d, tq = attn.shape
        attn_c = attn.reshape(h * d, tq)                                 # [C, tq], channel = h*D + d
        # conv_o fused: single full-depth (K = C) matmul instead of an H-way
        # per-head loop; output written directly in NCT layout (lane = time).
        out = jnp.dot(wo_ref[...], attn_c,
                      preferred_element_type=jnp.float32)                # [C, tq]
        o_ref[0] = (out + bo_ref[...]).astype(o_ref.dtype)


# ---------------------------------------------------------------------------
# Wrapper
# ---------------------------------------------------------------------------
def _round_up(a, m):
    return (a + m - 1) // m * m


def self_attention(x_nct, params, *, n_heads, max_tile=256):
    """VITS SelfAttention forward. x_nct: [B, C, T] float32. Returns [B, C, T]."""
    B, C, T = x_nct.shape
    assert C % n_heads == 0
    assert max_tile % 128 == 0
    D = C // n_heads
    scale = math.sqrt(D)
    wq, bq, wk, bk, wv, bv, wo, bo = params

    # Time tiling: T stays the lane dim everywhere (NCT in, NCT out), so HBM
    # tiles are lane-dense whenever t_tile is a multiple of 128 (or T itself
    # for the single-tile case), regardless of C or D.
    if T <= max_tile:
        t_tile, T_pad = T, T
    else:
        t_tile = max_tile
        T_pad = _round_up(T, t_tile)
    needs_mask = T_pad != T
    x_p = jnp.pad(x_nct, ((0, 0), (0, 0), (0, T_pad - T))) if needs_mask else x_nct
    n_t = T_pad // t_tile

    # Fused QKV weight [3C, C] in bf16; 1/sqrt(D) folded into the q rows/bias so
    # the kernels never multiply by it.
    w_qkv = jnp.concatenate([wq / scale, wk, wv], axis=0).astype(jnp.bfloat16)
    b_qkv = jnp.concatenate([bq / scale, bk, bv]).astype(jnp.float32).reshape(3 * C, 1)
    bo_col = bo.reshape(C, 1)

    qkv_shape = jax.ShapeDtypeStruct((B, n_heads, D, T_pad), jnp.bfloat16)

    # --- Kernel 1: QKV projection -----------------------------------------
    q, k, v = pl.pallas_call(
        _qkv_proj_kernel,
        out_shape=[qkv_shape] * 3,
        grid_spec=pltpu.PrefetchScalarGridSpec(
            num_scalar_prefetch=0,
            grid=(B, n_t),
            in_specs=[
                pl.BlockSpec((1, C, t_tile), lambda b, t: (b, 0, t)),        # x (NCT)
                pl.BlockSpec((3 * C, C), lambda b, t: (0, 0)),               # W_qkv (bf16)
                pl.BlockSpec((3 * C, 1), lambda b, t: (0, 0)),               # b_qkv
            ],
            out_specs=[
                pl.BlockSpec((1, n_heads, D, t_tile), lambda b, t: (b, 0, 0, t)),
            ] * 3,
        ),
        compiler_params=pltpu.CompilerParams(
            dimension_semantics=("parallel", "parallel"),
            vmem_limit_bytes=_VMEM_LIMIT),
    )(x_p, w_qkv, b_qkv)

    # --- Kernel 2: flash attention + output projection ---------------------
    out_nct = pl.pallas_call(
        functools.partial(_flash_attn_kernel, t_actual=T, needs_mask=needs_mask),
        out_shape=jax.ShapeDtypeStruct((B, C, T_pad), x_nct.dtype),
        grid_spec=pltpu.PrefetchScalarGridSpec(
            num_scalar_prefetch=0,
            grid=(B, n_t, n_t),
            in_specs=[
                pl.BlockSpec((1, n_heads, D, t_tile),
                             lambda b, qi, ki: (b, 0, 0, qi)),               # q
                pl.BlockSpec((1, n_heads, D, t_tile),
                             lambda b, qi, ki: (b, 0, 0, ki)),               # k
                pl.BlockSpec((1, n_heads, D, t_tile),
                             lambda b, qi, ki: (b, 0, 0, ki)),               # v
                pl.BlockSpec((C, C), lambda b, qi, ki: (0, 0)),              # Wo (f32)
                pl.BlockSpec((C, 1), lambda b, qi, ki: (0, 0)),              # bo
            ],
            out_specs=pl.BlockSpec((1, C, t_tile), lambda b, qi, ki: (b, 0, qi)),
            scratch_shapes=[
                pltpu.VMEM((n_heads, 1, t_tile), jnp.float32),               # running max
                pltpu.VMEM((n_heads, 1, t_tile), jnp.float32),               # running sum
                pltpu.VMEM((n_heads, D, t_tile), jnp.float32),               # accumulator
            ],
        ),
        compiler_params=pltpu.CompilerParams(
            dimension_semantics=("parallel", "parallel", "arbitrary"),
            vmem_limit_bytes=_VMEM_LIMIT),
    )(q, k, v, wo, bo_col)

    if needs_mask:
        out_nct = out_nct[:, :, :T]
    return out_nct


# ---------------------------------------------------------------------------
# Pure-JAX f32 reference (replicates the PyTorch forward; window_size=None,
# attn_mask=None, dropout=0).
# ---------------------------------------------------------------------------
def _reference(x_nct, params, *, n_heads):
    B, C, T = x_nct.shape
    D = C // n_heads
    scale = math.sqrt(D)
    wq, bq, wk, bk, wv, bv, wo, bo = params

    def conv1x1(x, w, b):                                          # x: [B, C, T]
        return jnp.einsum('oc,bct->bot', w, x) + b[None, :, None]

    q = conv1x1(x_nct, wq, bq).reshape(B, n_heads, D, T)
    k = conv1x1(x_nct, wk, bk).reshape(B, n_heads, D, T)
    v = conv1x1(x_nct, wv, bv).reshape(B, n_heads, D, T)

    scores = jnp.einsum('bhdt,bhds->bhts', q / scale, k)           # [B,H,T,T]
    p = jax.nn.softmax(scores, axis=-1)
    out = jnp.einsum('bhts,bhds->bhtd', p, v)                      # [B,H,T,D]
    out = jnp.transpose(out, (0, 1, 3, 2)).reshape(B, C, T)        # [B,C,T]
    return conv1x1(out, wo, bo)


def make_params(key, channels):
    C = channels
    ks = jax.random.split(key, 8)
    xavier = math.sqrt(6.0 / (C + C))              # xavier_uniform for square 1x1 conv
    bias_bound = 1.0 / math.sqrt(C)                # torch Conv1d default bias init
    wq = jax.random.uniform(ks[0], (C, C), jnp.float32, -xavier, xavier)
    wk = jax.random.uniform(ks[1], (C, C), jnp.float32, -xavier, xavier)
    wv = jax.random.uniform(ks[2], (C, C), jnp.float32, -xavier, xavier)
    wo = jax.random.uniform(ks[3], (C, C), jnp.float32, -xavier, xavier)
    bq = jax.random.uniform(ks[4], (C,), jnp.float32, -bias_bound, bias_bound)
    bk = jax.random.uniform(ks[5], (C,), jnp.float32, -bias_bound, bias_bound)
    bv = jax.random.uniform(ks[6], (C,), jnp.float32, -bias_bound, bias_bound)
    bo = jax.random.uniform(ks[7], (C,), jnp.float32, -bias_bound, bias_bound)
    return (wq, bq, wk, bk, wv, bv, wo, bo)


if __name__ == "__main__":
    key = jax.random.PRNGKey(0)

    # Tolerance note: q/k/v and the softmax probabilities are stored / fed to
    # the MXU in bfloat16 (per the perf review), so the kernel is compared to
    # the exact f32 reference with a bf16-scale tolerance.  Semantic / layout
    # bugs would produce O(0.1-1) errors and still fail this check.
    ATOL = RTOL = 3e-2

    # Case 1: single-tile path (no padding, no mask).
    B, C, T, H = 2, 32, 16, 4
    k_x1, k_p1, key = jax.random.split(key, 3)
    x1 = jax.random.normal(k_x1, (B, C, T), dtype=jnp.float32)
    params1 = make_params(k_p1, C)
    out1 = jax.block_until_ready(self_attention(x1, params1, n_heads=H))
    ref1 = _reference(x1, params1, n_heads=H)
    assert out1.shape == (B, C, T)
    assert jnp.allclose(out1, ref1, atol=ATOL, rtol=RTOL), "case1 mismatch vs reference"

    # Case 2: multi-tile kv loop + trailing-tile padding mask (T=200 padded to
    # 256 with t_tile=128 -> 2 q tiles x 2 kv tiles, mask on the last kv tile).
    B2, C2, T2, H2 = 2, 32, 200, 4
    k_x2, k_p2, _ = jax.random.split(key, 3)
    x2 = jax.random.normal(k_x2, (B2, C2, T2), dtype=jnp.float32)
    params2 = make_params(k_p2, C2)
    out2 = jax.block_until_ready(
        self_attention(x2, params2, n_heads=H2, max_tile=128))
    ref2 = _reference(x2, params2, n_heads=H2)
    assert out2.shape == (B2, C2, T2)
    assert jnp.allclose(out2, ref2, atol=ATOL, rtol=RTOL), "case2 mismatch vs reference"

    print("KERNEL_OK")
</pallas_src>

<mosaic_0001>
module attributes {stable_mosaic.version = 11 : i64} {
  func.func @_qkv_proj_kernel(%arg0: i32, %arg1: i32, %arg2: memref<1x32x16xf32, #tpu.memory_space<vmem>>, %arg3: memref<96x32xbf16, #tpu.memory_space<vmem>>, %arg4: memref<96x1xf32, #tpu.memory_space<vmem>>, %arg5: memref<1x4x8x16xbf16, #tpu.memory_space<vmem>>, %arg6: memref<1x4x8x16xbf16, #tpu.memory_space<vmem>>, %arg7: memref<1x4x8x16xbf16, #tpu.memory_space<vmem>>) attributes {dimension_semantics = [#tpu.dimension_semantics<parallel>, #tpu.dimension_semantics<parallel>], iteration_bounds = array<i64: 2, 1>, scalar_prefetch = 0 : i64, scratch_operands = 0 : i64, tpu.core_type = #tpu.core_type<tc>, window_params = [{transform_indices = @transform_0, window_bounds = array<i64: 1, 32, 16>}, {pipeline_mode = #tpu.pipeline_mode<synchronous>, transform_indices = @transform_1, window_bounds = array<i64: 96, 32>}, {pipeline_mode = #tpu.pipeline_mode<synchronous>, transform_indices = @transform_2, window_bounds = array<i64: 96, 1>}, {transform_indices = @transform_3, window_bounds = array<i64: 1, 4, 8, 16>}, {transform_indices = @transform_4, window_bounds = array<i64: 1, 4, 8, 16>}, {transform_indices = @transform_5, window_bounds = array<i64: 1, 4, 8, 16>}]} {
    %c0 = arith.constant 0 : index
    %c0_0 = arith.constant 0 : index
    %c0_1 = arith.constant 0 : index
    %0 = vector.load %arg2[%c0, %c0_0, %c0_1] : memref<1x32x16xf32, #tpu.memory_space<vmem>>, vector<1x32x16xf32>
    %1 = vector.shape_cast %0 : vector<1x32x16xf32> to vector<32x16xf32>
    %2 = arith.truncf %1 : vector<32x16xf32> to vector<32x16xbf16>
    %c0_2 = arith.constant 0 : index
    %c0_3 = arith.constant 0 : index
    %3 = vector.load %arg3[%c0_2, %c0_3] : memref<96x32xbf16, #tpu.memory_space<vmem>>, vector<96x32xbf16>
    %cst = arith.constant dense<0.000000e+00> : vector<96x16xf32>
    %4 = tpu.matmul %3, %2, %cst {dimension_numbers = #tpu.dot_dimension_numbers<[1], [0], [0], [1], [0, 0, 1, 1], [], []>} : vector<96x32xbf16>, vector<32x16xbf16>, vector<96x16xf32> -> vector<96x16xf32>
    %c0_4 = arith.constant 0 : index
    %c0_5 = arith.constant 0 : index
    %5 = vector.load %arg4[%c0_4, %c0_5] : memref<96x1xf32, #tpu.memory_space<vmem>>, vector<96x1xf32>
    %6 = vector.broadcast %5 : vector<96x1xf32> to vector<96x16xf32>
    %7 = arith.addf %4, %6 : vector<96x16xf32>
    %8 = arith.truncf %7 : vector<96x16xf32> to vector<96x16xbf16>
    %9 = vector.extract_strided_slice %8 {offsets = [0, 0], sizes = [32, 16], strides = [1, 1]} : vector<96x16xbf16> to vector<32x16xbf16>
    %10 = vector.shape_cast %9 : vector<32x16xbf16> to vector<4x8x16xbf16>
    %c0_6 = arith.constant 0 : index
    %c0_7 = arith.constant 0 : index
    %c0_8 = arith.constant 0 : index
    %c0_9 = arith.constant 0 : index
    %11 = vector.load %arg5[%c0_6, %c0_7, %c0_8, %c0_9] : memref<1x4x8x16xbf16, #tpu.memory_space<vmem>>, vector<1x4x8x16xbf16>
    %12 = vector.shape_cast %11 : vector<1x4x8x16xbf16> to vector<4x8x16xbf16>
    %13 = vector.shape_cast %10 : vector<4x8x16xbf16> to vector<1x4x8x16xbf16>
    tpu.vector_store %arg5[%c0_6, %c0_7, %c0_8, %c0_9], %13 {strides = array<i32>} : memref<1x4x8x16xbf16, #tpu.memory_space<vmem>>, vector<1x4x8x16xbf16>,
    %14 = vector.extract_strided_slice %8 {offsets = [32, 0], sizes = [32, 16], strides = [1, 1]} : vector<96x16xbf16> to vector<32x16xbf16>
    %15 = vector.shape_cast %14 : vector<32x16xbf16> to vector<4x8x16xbf16>
    %c0_10 = arith.constant 0 : index
    %c0_11 = arith.constant 0 : index
    %c0_12 = arith.constant 0 : index
    %c0_13 = arith.constant 0 : index
    %16 = vector.load %arg6[%c0_10, %c0_11, %c0_12, %c0_13] : memref<1x4x8x16xbf16, #tpu.memory_space<vmem>>, vector<1x4x8x16xbf16>
    %17 = vector.shape_cast %16 : vector<1x4x8x16xbf16> to vector<4x8x16xbf16>
    %18 = vector.shape_cast %15 : vector<4x8x16xbf16> to vector<1x4x8x16xbf16>
    tpu.vector_store %arg6[%c0_10, %c0_11, %c0_12, %c0_13], %18 {strides = array<i32>} : memref<1x4x8x16xbf16, #tpu.memory_space<vmem>>, vector<1x4x8x16xbf16>,
    %19 = vector.extract_strided_slice %8 {offsets = [64, 0], sizes = [32, 16], strides = [1, 1]} : vector<96x16xbf16> to vector<32x16xbf16>
    %20 = vector.shape_cast %19 : vector<32x16xbf16> to vector<4x8x16xbf16>
    %c0_14 = arith.constant 0 : index
    %c0_15 = arith.constant 0 : index
    %c0_16 = arith.constant 0 : index
    %c0_17 = arith.constant 0 : index
    %21 = vector.load %arg7[%c0_14, %c0_15, %c0_16, %c0_17] : memref<1x4x8x16xbf16, #tpu.memory_space<vmem>>, vector<1x4x8x16xbf16>
    %22 = vector.shape_cast %21 : vector<1x4x8x16xbf16> to vector<4x8x16xbf16>
    %23 = vector.shape_cast %20 : vector<4x8x16xbf16> to vector<1x4x8x16xbf16>
    tpu.vector_store %arg7[%c0_14, %c0_15, %c0_16, %c0_17], %23 {strides = array<i32>} : memref<1x4x8x16xbf16, #tpu.memory_space<vmem>>, vector<1x4x8x16xbf16>,
    return
  }
  func.func @transform_0(%arg0: i32, %arg1: i32) -> (i32, i32, i32) {
    %c0_i32 = arith.constant 0 : i32
    %c0_i32_0 = arith.constant 0 : i32
    return %arg0, %c0_i32, %arg1 : i32, i32, i32
  }
  func.func @transform_1(%arg0: i32, %arg1: i32) -> (i32, i32) {
    %c0_i32 = arith.constant 0 : i32
    %c0_i32_0 = arith.constant 0 : i32
    %c0_i32_1 = arith.constant 0 : i32
    return %c0_i32, %c0_i32_0 : i32, i32
  }
  func.func @transform_2(%arg0: i32, %arg1: i32) -> (i32, i32) {
    %c0_i32 = arith.constant 0 : i32
    %c0_i32_0 = arith.constant 0 : i32
    %c0_i32_1 = arith.constant 0 : i32
    return %c0_i32, %c0_i32_0 : i32, i32
  }
  func.func @transform_3(%arg0: i32, %arg1: i32) -> (i32, i32, i32, i32) {
    %c0_i32 = arith.constant 0 : i32
    %c0_i32_0 = arith.constant 0 : i32
    %c0_i32_1 = arith.constant 0 : i32
    return %arg0, %c0_i32, %c0_i32_0, %arg1 : i32, i32, i32, i32
  }
  func.func @transform_4(%arg0: i32, %arg1: i32) -> (i32, i32, i32, i32) {
    %c0_i32 = arith.constant 0 : i32
    %c0_i32_0 = arith.constant 0 : i32
    %c0_i32_1 = arith.constant 0 : i32
    return %arg0, %c0_i32, %c0_i32_0, %arg1 : i32, i32, i32, i32
  }
  func.func @transform_5(%arg0: i32, %arg1: i32) -> (i32, i32, i32, i32) {
    %c0_i32 = arith.constant 0 : i32
    %c0_i32_0 = arith.constant 0 : i32
    %c0_i32_1 = arith.constant 0 : i32
    return %arg0, %c0_i32, %c0_i32_0, %arg1 : i32, i32, i32, i32
  }
}

</mosaic_0001>

<bundles_post_ra>
// kernel: tpu_custom_call.1
= control target key start
LH: loop header
LB: loop body
LE: loop exit
PB: predicated region body
PF: predicated region fallthrough
CT: control target
= control target key end

     0   :  { %s1388_s0 = inlined_call_operand.vmem [shape: f32[2,32,16], index: 0, kind: input, shape index: {}]   ;;  %s1389_s1 = inlined_call_operand.vmem [shape: bf16[96,32], index: 1, kind: input, shape index: {}]   ;;  %s1390_s2 = inlined_call_operand.vmem [shape: f32[96,1], index: 2, kind: input, shape index: {}]   ;;  %s1391_s3 = inlined_call_operand.hbm [shape: bf16[2,4,8,16], index: 3, kind: output, shape index: {0}]   ;;  %s1392_s4 = inlined_call_operand.hbm [shape: bf16[2,4,8,16], index: 4, kind: output, shape index: {1}]   ;;  %s1393_s5 = inlined_call_operand.hbm [shape: bf16[2,4,8,16], index: 5, kind: output, shape index: {2}]  }
   0x1   :  { %1396 = sst [smem:[#allocation9_spill]] %s1388_s0 }
   0x2   :  { %11 = vsyncpa [#allocation3], 0 }
   0x3   :  { %13 = vsyncpa [#allocation3 + $0x1], 0 }
   0x4   :  { %14 = vsyncpa [#allocation5], 0 }
   0x5   :  { %16 = vsyncpa [#allocation5 + $0x1], 0  ;;  %s1089_s18 = smov 0   ;;  %s1091_s19 = smov 0  }
   0x6   :  { %s1093_s20 = smov 0   ;;  %s1095_s21 = smov 0  }
   0x7   :  { %s1097_s22 = smov 0   ;;  %s1099_s23 = smov 0  }
   0x8 LB: > { %s754_s24 = sadd.s32 4294967295, %s1051_s23   ;;  %s1394_s25 = sadd.s32 4294967294, %s1051_s23   ;;  %s1051_s23 = sphi %s1099_s23, %s22_s23   ;;  %s1047_s22 = sphi %s1097_s22, %s1408_s22   ;;  %s1043_s21 = sphi %s1095_s21, %s1407_s21   ;;  %s1039_s20 = sphi %s1093_s20, %s1406_s20   ;;  %s1035_s19 = sphi %s1091_s19, %s1405_s19   ;;  %s1031_s18 = sphi %s1089_s18, %s1404_s18  }
   0x9   : > { %s34_s26 = sadd.s32 1, %s1047_s22  ;;  %s113_s27 = sadd.s32 1, %s1039_s20 }
   0xa   : > { %p36_p0 = scmp.ge.s32.totalorder %s34_s26, 2  ;;  %p123_p1 = scmp.ne.s32.totalorder %s1039_s20, %s1035_s19 }
   0xb   : > { %p124_p2 = scmp.eq.s32.totalorder %s754_s24, 1  ;;  %p129_p3 = scmp.ne.s32.totalorder %s1035_s19, %s1031_s18 }
   0xc   : > { %s1410_s26 = smov (%p36_p0, %s34_s26), 0  ;;  %p130_p5 = scmp.eq.s32.totalorder %s1394_s25, 1 }
   0xd   : > { %p1131_p4 = por %p124_p2, %p123_p1  ;;  %s108_s29 = ssub.s32 %s1047_s22, %s1410_s26 }
   0xe   : > { %p758_p6 = scmp.ge.s32.totalorder %s1051_s23, 1  ;;  %p111_p7 = scmp.eq.s32.totalorder %s108_s29, 0 }
   0xf   : > { %p1140_p8 = por %p130_p5, %p129_p3  ;;  %p221_p9 = scmp.lt.s32.totalorder %s1051_s23, 3 }
  0x10   : > { %s1146_s6 = scalar_select %p111_p7, %s1039_s20, %s113_s27  }
  0x11   : > { %p222_p10 = pnand %p758_p6, %p221_p9 }
  0x12   : > { %p262_p11 = scmp.lt.s32.totalorder (!%p222_p10), %s1043_s21, 1  ;;  %s1399_s0 = sld [smem:[#allocation9_spill]] (!%p222_p10) }
  0x13   : > { %225 = sbr.rel (%p222_p10) target bundleno = 304 (0x130), region = 32  ;;  %s1395_s9 = sand.u32 (!%p222_p10), 1, %s1035_s19  }
  0x14   : > { %s1216_s10 = sshll.u32 (!%p222_p10), %s1395_s9, 4  ;;  %s1237_s16 = sshll.u32 (!%p222_p10), %s1043_s21, 8 }
  0x15   : > { %s1223_s13 = scalar_lea.vmem (!%p222_p10), [#allocation4], %s1216_s10  ;;  %s1255_s17 = scalar_lea.hbm (!%p222_p10), %s1392_s4, %s1237_s16 }
  0x16   : > { %s594_s14 = sshll.u32 (!%p222_p10), %s1223_s13, 4  ;;  %s1261_s7 = scalar_lea.hbm (!%p222_p10), %s1391_s3, %s1237_s16  ;;  %s1241_s14 = int_to_ptr.vmem [resolvable:$true] %s594_s14 }
  0x17   : > { %s919_s25 = scalar_lea.vmem (!%p222_p10), %s1241_s14, 256 }
  0x18   : > { %v913_v0 = vld [vmem:[%s1389_s1] sm:$0xff]   ;;  %vm391_vm0 = vcmask 261120   ;;  %v914_v1 = vld [vmem:[%s1389_s1 + $0x10] sm:$0xff]   ;;  %s263_s11 = scalar_select %p262_p11, %s1043_s21, 1  ;;  %v1053_v2 = vmov 0   ;;  %v296_v11 = vld [vmem:[%s1390_s2 + $0x38] sm:$0xff] }
  0x19   : > { %827 = vmatprep.mubr.msk.bf16.mxu0 %vm391_vm0, %v913_v0  ;;  %831 = vmatprep.mubr.msk.bf16.mxu1 %vm391_vm0, %v914_v1  ;;  %v295_v8 = vld [vmem:[%s1390_s2 + $0x30] sm:$0xff]  ;;  %v293_v9 = vld [vmem:[%s1390_s2 + $0x20] sm:$0xff]  ;;  %v294_v12 = vld [vmem:[%s1390_s2 + $0x28] sm:$0xff]  ;;  %vm511_vm1 = vcmask 125952   ;;  %p920_p12 = scmp.ne.s32.totalorder %s1241_s14, %s919_s25  ;;  %s1054_s21 = smov [#allocation4]  }
  0x1a   : > { %s799_s12 = sshll.u32 %s263_s11, 5  ;;  %912 = vset.pattern.permute.xlu1 %v1053_v2  ;;  %911 = vset.pattern.permute.xlu0 %v1053_v2  ;;  %v915_v13 = vld [vmem:[%s1389_s1 + $0x8] sm:$0xff]   ;;  %v916_v14 = vld [vmem:[%s1389_s1 + $0x18] sm:$0xff]   ;;  %v289_v16 = vld [vmem:[%s1390_s2] sm:$0xff]  ;;  %s1219_s11 = scalar_lea.vmem [#allocation2], %s1216_s10 }
  0x1b   : > { %s269_s15 = scalar_lea.vmem %s1399_s0, %s799_s12  ;;  %333 = vperm.xlu1 %912, %v295_v8   ;;  %323 = vperm.xlu0 %911, %v293_v9   ;;  %v290_v15 = vld [vmem:[%s1390_s2 + $0x8] sm:$0xff]  ;;  %v917_v17 = vld [vmem:[%s1389_s1 + $0x20] sm:$0xff]   ;;  %v292_v18 = vld [vmem:[%s1390_s2 + $0x18] sm:$0xff]  ;;  %s577_s12 = sshll.u32 %s1219_s11, 4  ;;  %s1239_s12 = int_to_ptr.vmem [resolvable:$true] %s577_s12 }
  0x1c   : > { %v273_v3 = vld [vmem:[%s269_s15 + $0x10] sm:$0xff]  ;;  %v274_v4 = vld [vmem:[%s269_s15 + $0x18] sm:$0xff]  ;;  %v271_v5 = vld [vmem:[%s269_s15] sm:$0xff]  ;;  %p921_p13 = pnand %p920_p12, %p1131_p4 }
  0x1d   : > { %v276_v6 = vpack.c.bf16 %v274_v4, %v273_v3  ;;  %v272_v7 = vld [vmem:[%s269_s15 + $0x8] sm:$0xff]  ;;  %v291_v19 = vld [vmem:[%s1390_s2 + $0x10] sm:$0xff]  ;;  %v297_v22 = vld [vmem:[%s1390_s2 + $0x40] sm:$0xff]  ;;  %s1234_s15 = sand.u32 1, %s754_s24   ;;  %s923_s24 = sshll.u32 %s1054_s21, 4  ;;  %s924_s24 = int_to_ptr.vmem [resolvable:$false] %s923_s24 }
  0x1e   : > { %v275_v10 = vpack.c.bf16 %v272_v7, %v271_v5  ;;  %v918_v20 = vld [vmem:[%s1389_s1 + $0x28] sm:$0xff]   ;;  %v300_v23 = vld [vmem:[%s1390_s2 + $0x58] sm:$0xff]  ;;  %v299_v24 = vld [vmem:[%s1390_s2 + $0x50] sm:$0xff]  ;;  %p922_p0 = pneg %p921_p13  ;;  %s925_s27 = scalar_lea.vmem %s924_s24, 512 }
  0x1f   : > { %823 = vmatprep.subr.bf16.mxu0 %v276_v6  ;;  %839 = vmatprep.subr.bf16.mxu1 %v276_v6  ;;  %v298_v21 = vld [vmem:[%s1390_s2 + $0x48] sm:$0xff]  ;;  %p926_p1 = scmp.lt.s32.totalorder %s1241_s14, %s924_s24  ;;  %p927_p2 = scmp.lt.s32.totalorder %s925_s27, %s919_s25 }
  0x20   : > { %824 = vmatpush3.bf16.msra.mxu0 %v276_v6  ;;  %841 = vmatpush3.bf16.msra.mxu1 %v276_v6 }
  0x21   : > { %825 = vmatprep.subr.bf16.mxu0 %v275_v10  ;;  %840 = vmatprep.subr.bf16.mxu1 %v275_v10  ;;  %p928_p3 = por %p927_p2, %p926_p1 }
  0x22   : > { %338 = vperm.xlu1 %912, %v296_v11   ;;  %328 = vperm.xlu0 %911, %v294_v12  }
  0x23   : > { %p929_p5 = pnand %p928_p3, %p922_p0 }
  0x24   : > { %826 = vmatpush3.bf16.msra.mxu0 %v275_v10  ;;  %842 = vmatpush3.bf16.msra.mxu1 %v275_v10 }
  0x26   : > { %308 = vperm.xlu1 %912, %v290_v15   ;;  %303 = vperm.xlu0 %911, %v289_v16  }
  0x27   : > { %828 = vmatmul.mubr.msk.bf16.vlgmr.msra.gmra.mxu0 %vm391_vm0, %v915_v13  ;;  %832 = vmatmul.mubr.msk.bf16.vlgmr.msra.gmra.mxu1 %vm391_vm0, %v916_v14 }
  0x28   : > { %835 = vmatprep.mubr.msk.bf16.mxu1 %vm391_vm0, %v917_v17 }
  0x2a   : > { %318 = vperm.xlu1 %912, %v292_v18   ;;  %313 = vperm.xlu0 %911, %v291_v19  }
  0x2e   : > { %348 = vperm.xlu1 %912, %v298_v21   ;;  %343 = vperm.xlu0 %911, %v297_v22  }
  0x2f   : > { %836 = vmatmul.mubr.msk.bf16.gmra.mxu1 %vm391_vm0, %v918_v20 }
  0x32   : > { %358 = vperm.xlu1 %912, %v300_v23   ;;  %353 = vperm.xlu0 %911, %v299_v24  }
  0x96   : > { %v324_v25 = vpop.permute.xlu0 %323  ;;  %v334_v26 = vpop.permute.xlu1 %333 }
  0x9d   : > { %v329_v27 = vpop.permute.xlu0 %328  ;;  %v339_v28 = vpop.permute.xlu1 %338 }
  0xa1   : > { %v304_v29 = vpop.permute.xlu0 %303  ;;  %v309_v30 = vpop.permute.xlu1 %308 }
  0xa5   : > { %v314_v31 = vpop.permute.xlu0 %313  ;;  %v319_v32 = vpop.permute.xlu1 %318 }
  0xa9   : > { %v344_v35 = vpop.permute.xlu0 %343  ;;  %v1226_v46 = vpop.permute.xlu1 %348 }
  0xad   : > { %v354_v57 = vpop.permute.xlu0 %353  ;;  %v359_v1 = vpop.permute.xlu1 %358 }
  0xe7   : > { %v829_v33 = vpop.f32.mrf.mxu0  ;;  %v833_v34 = vpop.f32.mrf.mxu1 }
  0xe8   : > { %v453_v36 = vadd.f32 %v829_v33, %v314_v31  ;;  %v469_v37 = vadd.f32 %v833_v34, %v334_v26 }
  0xe9   : > { %v444_v38 = vpop.f32.mrf.mxu0  ;;  %v460_v39 = vpop.f32.mrf.mxu1 }
  0xea   : > { %v802_v40 = vpack.c.bf16 %v453_v36, %v453_v36  ;;  %v806_v41 = vpack.c.bf16 %v469_v37, %v469_v37  ;;  %v445_v42 = vadd.f32 %v444_v38, %v304_v29  ;;  %v461_v43 = vadd.f32 %v460_v39, %v324_v25 }
  0xeb   : > { %v830_v44 = vpop.f32.mrf.mxu0  ;;  %v834_v45 = vpop.f32.mrf.mxu1 }
  0xec   : > { %514 = vst.msk [vmem:[%s1219_s11 + $0x8] sm:$0xf] %vm511_vm1, %v802_v40  ;;  %532 = vst.msk [vmem:[%s1223_s13 + $0x8] sm:$0xf] %vm511_vm1, %v806_v41  ;;  %v800_v47 = vpack.c.bf16 %v445_v42, %v445_v42  ;;  %v804_v48 = vpack.c.bf16 %v461_v43, %v461_v43  ;;  %v456_v49 = vadd.f32 %v830_v44, %v319_v32 }
  0xed   : > { %v472_v50 = vadd.f32 %v834_v45, %v339_v28  ;;  %v447_v51 = vpop.f32.mrf.mxu0  ;;  %v463_v52 = vpop.f32.mrf.mxu1 }
  0xee   : > { %512 = vst.msk [vmem:[%s1219_s11] sm:$0xf] %vm511_vm1, %v800_v47  ;;  %530 = vst.msk [vmem:[%s1223_s13] sm:$0xf] %vm511_vm1, %v804_v48  ;;  %v803_v53 = vpack.c.bf16 %v456_v49, %v456_v49  ;;  %v448_v55 = vadd.f32 %v447_v51, %v309_v30  ;;  %v464_v56 = vadd.f32 %v463_v52, %v329_v27 }
  0xef   : > { %v807_v54 = vpack.c.bf16 %v472_v50, %v472_v50  ;;  %v837_v58 = vpop.f32.mrf.mxu1 }
  0xf0   : > { %515 = vst.msk [vmem:[%s1219_s11 + $0xc] sm:$0xf] %vm511_vm1, %v803_v53  ;;  %v801_v59 = vpack.c.bf16 %v448_v55, %v448_v55  ;;  %v805_v60 = vpack.c.bf16 %v464_v56, %v464_v56  ;;  %v485_v61 = vadd.f32 %v837_v58, %v354_v57 }
  0xf1   : > { %533 = vst.msk [vmem:[%s1223_s13 + $0xc] sm:$0xf] %vm511_vm1, %v807_v54  ;;  %v476_v62 = vpop.f32.mrf.mxu1 }
  0xf2   : > { %513 = vst.msk [vmem:[%s1219_s11 + $0x4] sm:$0xf] %vm511_vm1, %v801_v59  ;;  %531 = vst.msk [vmem:[%s1223_s13 + $0x4] sm:$0xf] %vm511_vm1, %v805_v60  ;;  %v810_v63 = vpack.c.bf16 %v485_v61, %v485_v61  ;;  %v477_v0 = vadd.f32 %v476_v62, %v344_v35 }
  0xf3   : > { %v838_v2 = vpop.f32.mrf.mxu1 }
  0xf4   : > { %932 = shalt.err (!%p929_p5)
}
  0xf5   : > { %s933_s11 = scalar_lea.hbm %s1255_s17, 256  ;;  %s937_s21 = scalar_lea.hbm %s1392_s4, 512 }
  0xf6   : > { %p934_p6 = scmp.ne.s32.totalorder %s1255_s17, %s933_s11  ;;  %p938_p10 = scmp.lt.s32.totalorder %s1255_s17, %s1392_s4 }
  0xf7   : > { %p939_p11 = scmp.lt.s32.totalorder %s937_s21, %s933_s11 }
  0xf8   : > { %p935_p7 = pnand %p934_p6, %p1131_p4 }
  0xf9   : > { %p940_p12 = por %p939_p11, %p938_p10 }
  0xfa   : > { %p936_p9 = pneg %p935_p7 }
  0xfc   : > { %p941_p13 = pnand %p940_p12, %p936_p9 }
  0xfe   : > { %944 = shalt.err (!%p941_p13)
}
  0xff   : > { %s1055_s25 = smov 64   ;;  %s1056_s24 = smov 4   ;;  %v808_v3 = vpack.c.bf16 %v477_v0, %v477_v0  ;;  %v488_v4 = vadd.f32 %v838_v2, %v359_v1 }
 0x100   : > { %s1400_s9 = scalar_lea.sflag [#allocation5], %s1234_s15  ;;  %s1294_s8 = scalar_lea.vmem [#allocation6], %s1216_s10 }
 0x101   : > { %844 = dma.vmem_to_hbm [thread:$0]  (%p1131_p4), %s1241_s14, 256, %s1255_s17, %s1400_s9, %s1055_s25, %s1055_s25, %s1056_s24  }
 0x102   : > { %550 = vst.msk [vmem:[%s1294_s8 + $0x8] sm:$0xf] %vm511_vm1, %v810_v63  ;;  %s1401_s27 = sand.u32 1, %s1035_s19   ;;  %s945_s13 = scalar_lea.vmem %s1239_s12, 256 }
 0x103   : > { %s553_s11 = scalar_lea.sflag [#allocation3], %s1401_s27  ;;  %p946_p0 = scmp.ne.s32.totalorder %s1239_s12, %s945_s13 }
 0x104   : > { %s1057_s29 = smov [#allocation2]  }
 0x105   : > { %p947_p1 = pnand %p946_p0, %p1131_p4  ;;  %s949_s21 = sshll.u32 %s1057_s29, 4  ;;  %s950_s21 = int_to_ptr.vmem [resolvable:$false] %s949_s21 }
 0x106   : > { %s951_s0 = scalar_lea.vmem %s950_s21, 512  ;;  %p952_p3 = scmp.lt.s32.totalorder %s1239_s12, %s950_s21 }
 0x107   : > { %p948_p2 = pneg %p947_p1  ;;  %p953_p5 = scmp.lt.s32.totalorder %s951_s0, %s945_s13 }
 0x109   : > { %p954_p6 = por %p953_p5, %p952_p3 }
 0x10b   : > { %p955_p7 = pnand %p954_p6, %p948_p2 }
 0x10d   : > { %958 = shalt.err (!%p955_p7)
}
 0x10e   : > { %s959_s10 = scalar_lea.hbm %s1261_s7, 256  ;;  %s963_s9 = scalar_lea.hbm %s1391_s3, 512 }
 0x10f   : > { %p960_p9 = scmp.ne.s32.totalorder %s1261_s7, %s959_s10  ;;  %p964_p12 = scmp.lt.s32.totalorder %s1261_s7, %s1391_s3 }
 0x110   : > { %p965_p13 = scmp.lt.s32.totalorder %s963_s9, %s959_s10 }
 0x111   : > { %p961_p10 = pnand %p960_p9, %p1131_p4 }
 0x112   : > { %p966_p0 = por %p965_p13, %p964_p12 }
 0x113   : > { %p962_p11 = pneg %p961_p10 }
 0x115   : > { %p967_p1 = pnand %p966_p0, %p962_p11 }
 0x117   : > { %970 = shalt.err (!%p967_p1)
}
 0x118   : > { %843 = dma.vmem_to_hbm [thread:$0]  (%p1131_p4), %s1239_s12, 256, %s1261_s7, %s553_s11, %s1055_s25, %s1055_s25, %s1056_s24   ;;  %v479_v5 = vpop.f32.mrf.mxu1  ;;  %v811_v6 = vpack.c.bf16 %v488_v4, %v488_v4 }
 0x119   : > { %s611_s0 = sshll.u32 %s1294_s8, 4  ;;  %548 = vst.msk [vmem:[%s1294_s8] sm:$0xf] %vm511_vm1, %v808_v3  ;;  %v480_v7 = vadd.f32 %v479_v5, %v1226_v46  ;;  %s1335_s10 = scalar_lea.hbm %s1393_s5, %s1237_s16  ;;  %s1327_s0 = int_to_ptr.vmem [resolvable:$true] %s611_s0 }
 0x11a   : > { %551 = vst.msk [vmem:[%s1294_s8 + $0xc] sm:$0xf] %vm511_vm1, %v811_v6  ;;  %s971_s12 = scalar_lea.vmem %s1327_s0, 256  ;;  %s1058_s7 = smov [#allocation6]  }
 0x11b   : > { %v809_v8 = vpack.c.bf16 %v480_v7, %v480_v7  ;;  %p972_p2 = scmp.ne.s32.totalorder %s1327_s0, %s971_s12  ;;  %s975_s11 = sshll.u32 %s1058_s7, 4  ;;  %s976_s11 = int_to_ptr.vmem [resolvable:$false] %s975_s11 }
 0x11c   : > { %s977_s14 = scalar_lea.vmem %s976_s11, 512  ;;  %p978_p6 = scmp.lt.s32.totalorder %s1327_s0, %s976_s11 }
 0x11d   : > { %549 = vst.msk [vmem:[%s1294_s8 + $0x4] sm:$0xf] %vm511_vm1, %v809_v8  ;;  %p973_p3 = pnand %p972_p2, %p1131_p4  ;;  %p979_p7 = scmp.lt.s32.totalorder %s977_s14, %s971_s12 }
 0x11f   : > { %p974_p5 = pneg %p973_p3  ;;  %p980_p9 = por %p979_p7, %p978_p6 }
 0x121   : > { %p981_p10 = pnand %p980_p9, %p974_p5 }
 0x123   : > { %984 = shalt.err (!%p981_p10)
}
 0x124   : > { %s985_s16 = scalar_lea.hbm %s1335_s10, 256  ;;  %s989_s9 = scalar_lea.hbm %s1393_s5, 512 }
 0x125   : > { %p986_p11 = scmp.ne.s32.totalorder %s1335_s10, %s985_s16  ;;  %p990_p0 = scmp.lt.s32.totalorder %s1335_s10, %s1393_s5 }
 0x126   : > { %p991_p1 = scmp.lt.s32.totalorder %s989_s9, %s985_s16 }
 0x127   : > { %p987_p12 = pnand %p986_p11, %p1131_p4 }
 0x128   : > { %p992_p2 = por %p991_p1, %p990_p0 }
 0x129   : > { %p988_p13 = pneg %p987_p12 }
 0x12b   : > { %p993_p3 = pnand %p992_p2, %p988_p13 }
 0x12d   : > { %996 = shalt.err (!%p993_p3)
}
 0x12e   : > { %s1402_s13 = scalar_lea.sflag [#allocation5], %s1234_s15 }
 0x12f   : > { %845 = dma.vmem_to_hbm [thread:$0]  (%p1131_p4), %s1327_s0, 256, %s1335_s10, %s1402_s13, %s1055_s25, %s1055_s25, %s1056_s24  }
 0x130 PF: > { %p859_p5 = scmp.ge.s32.totalorder %s1051_s23, 2  ;;  %s626_s21 = sand.u32 1, %s1031_s18  }
 0x131   : > { %s627_s12 = scalar_lea.sflag [#allocation3], %s626_s21 }
 0x132   : > { %p850_p6 = pnand %p859_p5, %p1140_p8 }
 0x134   : > { %p851_p7 = pneg %p850_p6 }
 0x136   : > { %1022 = dma.done.wait (%p851_p7), %s627_s12, 256  }
 0x137   : > { %1024 = vsyncadd (%p851_p7), %s627_s12, 4294967040  ;;  %s1403_s28 = sadd.s32 4294967294, %s1051_s23  }
 0x138   : > { %s635_s7 = sand.u32 1, %s1403_s28  }
 0x139   : > { %s636_s11 = scalar_lea.sflag [#allocation5], %s635_s7 }
 0x13a   : > { %1026 = dma.done.wait (%p851_p7), %s636_s11, 512  }
 0x13b   : > { %1028 = vsyncadd (%p851_p7), %s636_s11, 4294966784  ;;  %s22_s23 = sadd.s32 1, %s1051_s23   ;;  %s1404_s18 = smov %s1035_s19 }
 0x13c   : > { %p19_p4 = scmp.ge.s32.totalorder %s22_s23, 4   ;;  %s1405_s19 = smov %s1039_s20 }
 0x13d   : > { %s1406_s20 = smov %s1146_s6  ;;  %s1407_s21 = smov %s1047_s22 }
 0x13e   : > { %s1408_s22 = smov %s1410_s26  ;;  %21 = sbr.rel (!%p19_p4) target bundleno = 8 (0x8), region = 99 }
 0x143   :  { %650 = vsyncpa [#allocation3], 1 }
 0x144   :  { %652 = vsyncpa [#allocation3 + $0x1], 1 }
 0x145   :  { %653 = vsyncpa [#allocation5], 1 }
 0x146   :  { %655 = vsyncpa [#allocation5 + $0x1], 1 }

</bundles_post_ra>
